<compile_context>
chip_gen: v7x
topology: tpu7x:2x2x1
jax: 0.10.0
libtpu: 0.0.40
codegen_flags: <defaults>
</compile_context>

<pallas_src>
import math

import jax
import jax.numpy as jnp
import numpy as np
from jax.experimental import pallas as pl
from jax.experimental.pallas import tpu as pltpu


# Concatenated temporal table layout (rows): minute(60) | hour(24) | weekday(7) | day(32) | month(13)
_TABLE_SIZES = (60, 24, 7, 32, 13)
_TABLE_OFFSETS = (0, 60, 84, 91, 123)          # row offset of each table in the fused table
_K_TAB = 256                                   # fused contraction depth, padded to a 128 multiple

# x_mark columns are [month, day, weekday, hour, minute, second].
# "second" reuses the minute table (mirrors the PyTorch TemporalEmbedding quirk).
_COL_TO_OFFSET = (
    _TABLE_OFFSETS[4],   # col 0: month
    _TABLE_OFFSETS[3],   # col 1: day
    _TABLE_OFFSETS[2],   # col 2: weekday
    _TABLE_OFFSETS[1],   # col 3: hour
    _TABLE_OFFSETS[0],   # col 4: minute
    _TABLE_OFFSETS[0],   # col 5: second -> minute table
)


def _round_up(n, m):
    return ((n + m - 1) // m) * m


# ----------------------------- Pallas kernel ------------------------------ #
def data_embedding_kernel(xcat_ref, ids_ref, wconv_ref, table_ref, o_ref):
    xcat = xcat_ref[...]            # (R, 3*c_in) f32  = [x_{l-1} | x_l | x_{l+1}]
    ids = ids_ref[...]              # (R, 6)      int32
    rows = xcat.shape[0]
    k_tab = table_ref.shape[0]

    # --- TokenEmbedding: Conv1d(c_in -> d_model, k=3, circular, no bias) as ONE matmul ---
    acc = jnp.dot(xcat, wconv_ref[...], preferred_element_type=jnp.float32)

    # --- TemporalEmbedding: 6 fixed-table lookups fused into one multi-hot matmul ---
    iota = jax.lax.broadcasted_iota(jnp.int32, (rows, k_tab), 1)
    mh = (iota == (ids[:, 0:1] + _COL_TO_OFFSET[0])).astype(jnp.int32)
    for c in range(1, 6):
        mh = mh + (iota == (ids[:, c:c + 1] + _COL_TO_OFFSET[c])).astype(jnp.int32)
    acc = acc + jnp.dot(mh.astype(jnp.float32), table_ref[...],
                        preferred_element_type=jnp.float32)

    # Dropout(p=0.1) as identity (eval mode).
    o_ref[...] = acc.astype(o_ref.dtype)


# ------------------------------ host wrapper ------------------------------ #
def data_embedding_wo_pos(x, x_mark, w_conv, tables, *, row_tile=512):
    """x: (B, L, c_in) f32; x_mark: (B, L, 6) int; w_conv: (3, c_in, d_model) f32;
    tables: (minute, hour, weekday, day, month) fixed-embedding tables."""
    B, L, c_in = x.shape
    d_model = w_conv.shape[-1]
    d_pad = _round_up(d_model, 128)            # lane-dense output / weight columns

    # Host-side circular shifts -> one lane-denser kernel input, no in-kernel roll.
    x_m1 = jnp.roll(x, 1, axis=1)              # x[(l-1) mod L]
    x_p1 = jnp.roll(x, -1, axis=1)             # x[(l+1) mod L]
    xcat = jnp.concatenate([x_m1, x, x_p1], axis=-1).reshape(B * L, 3 * c_in)
    xcat = xcat.astype(jnp.float32)

    ids = x_mark.astype(jnp.int32).reshape(B * L, 6)

    # Fused conv weight: out = [x_{l-1} | x_l | x_{l+1}] @ concat(W0, W1, W2)
    wcat = jnp.concatenate([w_conv[0], w_conv[1], w_conv[2]], axis=0)      # (3*c_in, d_model)
    wcat = jnp.pad(wcat, ((0, 0), (0, d_pad - d_model))).astype(jnp.float32)

    minute_t, hour_t, weekday_t, day_t, month_t = tables
    table_cat = jnp.concatenate([minute_t, hour_t, weekday_t, day_t, month_t], axis=0)
    table_cat = jnp.pad(table_cat,
                        ((0, _K_TAB - table_cat.shape[0]), (0, d_pad - d_model)))
    table_cat = table_cat.astype(jnp.float32)

    # Fold batches: tile the flattened token axis with large row tiles.
    n = B * L
    r = min(row_tile, _round_up(n, 8))
    n_pad = _round_up(n, r)
    if n_pad != n:
        xcat = jnp.pad(xcat, ((0, n_pad - n), (0, 0)))
        ids = jnp.pad(ids, ((0, n_pad - n), (0, 0)))

    out = pl.pallas_call(
        data_embedding_kernel,
        out_shape=jax.ShapeDtypeStruct((n_pad, d_pad), jnp.float32),
        grid=(n_pad // r,),
        in_specs=[
            pl.BlockSpec((r, 3 * c_in), lambda i: (i, 0)),
            pl.BlockSpec((r, 6), lambda i: (i, 0)),
            pl.BlockSpec((3 * c_in, d_pad), lambda i: (0, 0)),   # constant-index weight
            pl.BlockSpec((_K_TAB, d_pad), lambda i: (0, 0)),     # constant-index fused table
        ],
        out_specs=pl.BlockSpec((r, d_pad), lambda i: (i, 0)),
        compiler_params=pltpu.CompilerParams(dimension_semantics=("parallel",)),
    )(xcat, ids, wcat, table_cat)

    return out[:n, :d_model].reshape(B, L, d_model)


# --------------------------- parameter builders ---------------------------- #
def fixed_embedding_table(c_in, d_model):
    """Same construction as FixedEmbedding.__init__ (sin on even cols, cos on odd cols)."""
    pos = jnp.arange(c_in, dtype=jnp.float32)[:, None]
    div_term = jnp.exp(jnp.arange(0, d_model, 2, dtype=jnp.float32)
                       * -(math.log(10000.0) / d_model))
    w = jnp.zeros((c_in, d_model), dtype=jnp.float32)
    w = w.at[:, 0::2].set(jnp.sin(pos * div_term))
    w = w.at[:, 1::2].set(jnp.cos(pos * div_term))
    return w


def make_conv_weight(key, c_in, d_model):
    """Deterministic kaiming_normal_(fan_in, leaky_relu) init of Conv1d weight (d_model, c_in, 3),
    returned stacked as (3, c_in, d_model) so out = sum_k x_shift_k @ W[k]."""
    fan_in = c_in * 3
    gain = math.sqrt(2.0 / (1.0 + 0.01 ** 2))
    std = gain / math.sqrt(fan_in)
    w_torch = std * jax.random.normal(key, (d_model, c_in, 3), dtype=jnp.float32)
    return jnp.transpose(w_torch, (2, 1, 0))  # (3, c_in, d_model)


# ------------------------------- reference --------------------------------- #
def reference_forward(x, x_mark, w_conv, tables):
    minute_t, hour_t, weekday_t, day_t, month_t = tables
    x_m1 = jnp.roll(x, 1, axis=1)
    x_p1 = jnp.roll(x, -1, axis=1)
    conv = x_m1 @ w_conv[0] + x @ w_conv[1] + x_p1 @ w_conv[2]
    xm = x_mark.astype(jnp.int32)
    temporal = (minute_t[xm[..., 5]] + minute_t[xm[..., 4]]
                + hour_t[xm[..., 3]] + weekday_t[xm[..., 2]]
                + day_t[xm[..., 1]] + month_t[xm[..., 0]])
    return conv + temporal


# ---------------------------------- main ----------------------------------- #
if __name__ == "__main__":
    B, L, c_in, d_model = 2, 8, 4, 32

    key = jax.random.PRNGKey(0)
    kx, kw, k0, k1, k2, k3, k4, k5 = jax.random.split(key, 8)

    x = jax.random.normal(kx, (B, L, c_in), dtype=jnp.float32)
    # x_mark columns: [month, day, weekday, hour, minute, second]
    x_mark = jnp.stack([
        jax.random.randint(k0, (B, L), 0, 13),
        jax.random.randint(k1, (B, L), 0, 32),
        jax.random.randint(k2, (B, L), 0, 7),
        jax.random.randint(k3, (B, L), 0, 24),
        jax.random.randint(k4, (B, L), 0, 60),
        jax.random.randint(k5, (B, L), 0, 60),
    ], axis=-1).astype(jnp.int32)

    w_conv = make_conv_weight(kw, c_in, d_model)
    tables = (
        fixed_embedding_table(60, d_model),   # minute (also used for "second", as in PyTorch)
        fixed_embedding_table(24, d_model),   # hour
        fixed_embedding_table(7, d_model),    # weekday
        fixed_embedding_table(32, d_model),   # day
        fixed_embedding_table(13, d_model),   # month
    )

    out = data_embedding_wo_pos(x, x_mark, w_conv, tables)
    out = jax.block_until_ready(out)

    ref = reference_forward(x, x_mark, w_conv, tables)
    np.testing.assert_allclose(np.asarray(out), np.asarray(ref), rtol=1e-5, atol=1e-5)

    print("KERNEL_OK")
</pallas_src>

<mosaic_0001>
module attributes {stable_mosaic.version = 11 : i64} {
  func.func @data_embedding_kernel(%arg0: i32, %arg1: memref<16x12xf32, #tpu.memory_space<vmem>>, %arg2: memref<16x6xi32, #tpu.memory_space<vmem>>, %arg3: memref<12x128xf32, #tpu.memory_space<vmem>>, %arg4: memref<256x128xf32, #tpu.memory_space<vmem>>, %arg5: memref<16x128xf32, #tpu.memory_space<vmem>>) attributes {dimension_semantics = [#tpu.dimension_semantics<parallel>], iteration_bounds = array<i64: 1>, scalar_prefetch = 0 : i64, scratch_operands = 0 : i64, tpu.core_type = #tpu.core_type<tc>, window_params = [{transform_indices = @transform_0, window_bounds = array<i64: 16, 12>}, {transform_indices = @transform_1, window_bounds = array<i64: 16, 6>}, {pipeline_mode = #tpu.pipeline_mode<synchronous>, transform_indices = @transform_2, window_bounds = array<i64: 12, 128>}, {pipeline_mode = #tpu.pipeline_mode<synchronous>, transform_indices = @transform_3, window_bounds = array<i64: 256, 128>}, {transform_indices = @transform_4, window_bounds = array<i64: 16, 128>}]} {
    %c0 = arith.constant 0 : index
    %c0_0 = arith.constant 0 : index
    %0 = vector.load %arg1[%c0, %c0_0] : memref<16x12xf32, #tpu.memory_space<vmem>>, vector<16x12xf32>
    %c0_1 = arith.constant 0 : index
    %c0_2 = arith.constant 0 : index
    %1 = vector.load %arg2[%c0_1, %c0_2] : memref<16x6xi32, #tpu.memory_space<vmem>>, vector<16x6xi32>
    %c0_3 = arith.constant 0 : index
    %c0_4 = arith.constant 0 : index
    %2 = vector.load %arg3[%c0_3, %c0_4] : memref<12x128xf32, #tpu.memory_space<vmem>>, vector<12x128xf32>
    %cst = arith.constant dense<0.000000e+00> : vector<16x128xf32>
    %3 = tpu.matmul %0, %2, %cst {dimension_numbers = #tpu.dot_dimension_numbers<[1], [0], [0], [1], [0, 0, 1, 1], [], []>} : vector<16x12xf32>, vector<12x128xf32>, vector<16x128xf32> -> vector<16x128xf32>
    %4 = tpu.iota {dimensions = array<i32: 1>} : vector<16x256xi32>
    %5 = vector.extract_strided_slice %1 {offsets = [0, 0], sizes = [16, 1], strides = [1, 1]} : vector<16x6xi32> to vector<16x1xi32>
    %c123_i32 = arith.constant 123 : i32
    %6 = vector.broadcast %c123_i32 : i32 to vector<16x1xi32>
    %7 = arith.addi %5, %6 : vector<16x1xi32>
    %8 = vector.broadcast %7 : vector<16x1xi32> to vector<16x256xi32>
    %9 = arith.cmpi eq, %4, %8 : vector<16x256xi32>
    %10 = arith.extui %9 : vector<16x256xi1> to vector<16x256xi32>
    %11 = vector.extract_strided_slice %1 {offsets = [0, 1], sizes = [16, 1], strides = [1, 1]} : vector<16x6xi32> to vector<16x1xi32>
    %c91_i32 = arith.constant 91 : i32
    %12 = vector.broadcast %c91_i32 : i32 to vector<16x1xi32>
    %13 = arith.addi %11, %12 : vector<16x1xi32>
    %14 = vector.broadcast %13 : vector<16x1xi32> to vector<16x256xi32>
    %15 = arith.cmpi eq, %4, %14 : vector<16x256xi32>
    %16 = arith.extui %15 : vector<16x256xi1> to vector<16x256xi32>
    %17 = arith.addi %10, %16 : vector<16x256xi32>
    %18 = vector.extract_strided_slice %1 {offsets = [0, 2], sizes = [16, 1], strides = [1, 1]} : vector<16x6xi32> to vector<16x1xi32>
    %c84_i32 = arith.constant 84 : i32
    %19 = vector.broadcast %c84_i32 : i32 to vector<16x1xi32>
    %20 = arith.addi %18, %19 : vector<16x1xi32>
    %21 = vector.broadcast %20 : vector<16x1xi32> to vector<16x256xi32>
    %22 = arith.cmpi eq, %4, %21 : vector<16x256xi32>
    %23 = arith.extui %22 : vector<16x256xi1> to vector<16x256xi32>
    %24 = arith.addi %17, %23 : vector<16x256xi32>
    %25 = vector.extract_strided_slice %1 {offsets = [0, 3], sizes = [16, 1], strides = [1, 1]} : vector<16x6xi32> to vector<16x1xi32>
    %c60_i32 = arith.constant 60 : i32
    %26 = vector.broadcast %c60_i32 : i32 to vector<16x1xi32>
    %27 = arith.addi %25, %26 : vector<16x1xi32>
    %28 = vector.broadcast %27 : vector<16x1xi32> to vector<16x256xi32>
    %29 = arith.cmpi eq, %4, %28 : vector<16x256xi32>
    %30 = arith.extui %29 : vector<16x256xi1> to vector<16x256xi32>
    %31 = arith.addi %24, %30 : vector<16x256xi32>
    %32 = vector.extract_strided_slice %1 {offsets = [0, 4], sizes = [16, 1], strides = [1, 1]} : vector<16x6xi32> to vector<16x1xi32>
    %c0_i32 = arith.constant 0 : i32
    %33 = vector.broadcast %c0_i32 : i32 to vector<16x1xi32>
    %34 = arith.addi %32, %33 : vector<16x1xi32>
    %35 = vector.broadcast %34 : vector<16x1xi32> to vector<16x256xi32>
    %36 = arith.cmpi eq, %4, %35 : vector<16x256xi32>
    %37 = arith.extui %36 : vector<16x256xi1> to vector<16x256xi32>
    %38 = arith.addi %31, %37 : vector<16x256xi32>
    %39 = vector.extract_strided_slice %1 {offsets = [0, 5], sizes = [16, 1], strides = [1, 1]} : vector<16x6xi32> to vector<16x1xi32>
    %c0_i32_5 = arith.constant 0 : i32
    %40 = vector.broadcast %c0_i32_5 : i32 to vector<16x1xi32>
    %41 = arith.addi %39, %40 : vector<16x1xi32>
    %42 = vector.broadcast %41 : vector<16x1xi32> to vector<16x256xi32>
    %43 = arith.cmpi eq, %4, %42 : vector<16x256xi32>
    %44 = arith.extui %43 : vector<16x256xi1> to vector<16x256xi32>
    %45 = arith.addi %38, %44 : vector<16x256xi32>
    %46 = arith.sitofp %45 : vector<16x256xi32> to vector<16x256xf32>
    %c0_6 = arith.constant 0 : index
    %c0_7 = arith.constant 0 : index
    %47 = vector.load %arg4[%c0_6, %c0_7] : memref<256x128xf32, #tpu.memory_space<vmem>>, vector<256x128xf32>
    %cst_8 = arith.constant dense<0.000000e+00> : vector<16x128xf32>
    %48 = tpu.matmul %46, %47, %cst_8 {dimension_numbers = #tpu.dot_dimension_numbers<[1], [0], [0], [1], [0, 0, 1, 1], [], []>} : vector<16x256xf32>, vector<256x128xf32>, vector<16x128xf32> -> vector<16x128xf32>
    %49 = arith.addf %3, %48 : vector<16x128xf32>
    %c0_9 = arith.constant 0 : index
    %c0_10 = arith.constant 0 : index
    %50 = vector.load %arg5[%c0_9, %c0_10] : memref<16x128xf32, #tpu.memory_space<vmem>>, vector<16x128xf32>
    tpu.vector_store %arg5[%c0_9, %c0_10], %49 {strides = array<i32>} : memref<16x128xf32, #tpu.memory_space<vmem>>, vector<16x128xf32>,
    return
  }
  func.func @transform_0(%arg0: i32) -> (i32, i32) {
    %c0_i32 = arith.constant 0 : i32
    %c0_i32_0 = arith.constant 0 : i32
    return %arg0, %c0_i32 : i32, i32
  }
  func.func @transform_1(%arg0: i32) -> (i32, i32) {
    %c0_i32 = arith.constant 0 : i32
    %c0_i32_0 = arith.constant 0 : i32
    return %arg0, %c0_i32 : i32, i32
  }
  func.func @transform_2(%arg0: i32) -> (i32, i32) {
    %c0_i32 = arith.constant 0 : i32
    %c0_i32_0 = arith.constant 0 : i32
    %c0_i32_1 = arith.constant 0 : i32
    return %c0_i32, %c0_i32_0 : i32, i32
  }
  func.func @transform_3(%arg0: i32) -> (i32, i32) {
    %c0_i32 = arith.constant 0 : i32
    %c0_i32_0 = arith.constant 0 : i32
    %c0_i32_1 = arith.constant 0 : i32
    return %c0_i32, %c0_i32_0 : i32, i32
  }
  func.func @transform_4(%arg0: i32) -> (i32, i32) {
    %c0_i32 = arith.constant 0 : i32
    %c0_i32_0 = arith.constant 0 : i32
    return %arg0, %c0_i32 : i32, i32
  }
}

</mosaic_0001>

<bundles_post_ra>
// kernel: tpu_custom_call.1
= control target key start
LH: loop header
LB: loop body
LE: loop exit
PB: predicated region body
PF: predicated region fallthrough
CT: control target
= control target key end

     0   :  { %9 = vsyncpa [#allocation3], 0  ;;  %s734_s0 = inlined_call_operand.vmem [shape: f32[16,12], index: 0, kind: input, shape index: {}]   ;;  %s735_s1 = inlined_call_operand.vmem [shape: s32[16,6], index: 1, kind: input, shape index: {}]   ;;  %s736_s2 = inlined_call_operand.hbm [shape: f32[12,128], index: 2, kind: input, shape index: {}]   ;;  %s737_s3 = inlined_call_operand.hbm [shape: f32[256,128], index: 3, kind: input, shape index: {}]   ;;  %s738_s4 = inlined_call_operand.hbm [shape: f32[16,128], index: 4, kind: output, shape index: {}]  }
   0x1   :  { %10 = vsyncpa [#allocation6], 0 }
   0x2   :  { %11 = vsyncpa [#allocation4], 0  ;;  %s569_s15 = smov [#allocation2]   ;;  %s497_s19 = scalar_lea.hbm %s736_s2, 256 }
   0x3   :  { %s21_s16 = sshll.u32 %s569_s15, 4  ;;  %p498_p0 = scmp.ne.s32.totalorder %s736_s2, %s497_s19  ;;  %s22_s16 = int_to_ptr.vmem [resolvable:$true] %s21_s16 }
   0x4   :  { %p501_p1 = scmp.lt.u32.totalorder %s497_s19, %s736_s2 }
   0x6   :  { %p503_p2 = pnand %p501_p1, %p498_p0 }
   0x8   :  { %506 = shalt.err (!%p503_p2)
}
   0x9   :  { %s507_s24 = scalar_lea.vmem %s22_s16, 256  ;;  %p512_p4 = scmp.lt.s32.totalorder %s22_s16, %s22_s16 }
   0xa   :  { %p508_p3 = scmp.ne.s32.totalorder %s22_s16, %s507_s24  ;;  %p513_p5 = scmp.lt.s32.totalorder %s507_s24, %s507_s24 }
   0xc   :  { %p514_p6 = por %p513_p5, %p512_p4 }
   0xe   :  { %p515_p7 = pnand %p514_p6, %p508_p3 }
  0x10   :  { %518 = shalt.err (!%p515_p7)
}
  0x11   :  { %s570_s25 = smov 128   ;;  %s571_s26 = smov 8  }
  0x12   :  { %27 = dma.hbm_to_vmem [thread:$0]  %s736_s2, 256, %s22_s16, [#allocation3], %s570_s25, %s570_s25, %s571_s26  }
  0x13   :  { %s572_s29 = smov [#allocation5]   ;;  %s519_s7 = scalar_lea.hbm %s737_s3, 4096 }
  0x14   :  { %s33_s30 = sshll.u32 %s572_s29, 4  ;;  %p520_p8 = scmp.ne.s32.totalorder %s737_s3, %s519_s7  ;;  %s34_s30 = int_to_ptr.vmem [resolvable:$true] %s33_s30 }
  0x15   :  { %p523_p9 = scmp.lt.u32.totalorder %s519_s7, %s737_s3 }
  0x17   :  { %p525_p10 = pnand %p523_p9, %p520_p8 }
  0x19   :  { %528 = shalt.err (!%p525_p10)
}
  0x1a   :  { %s529_s12 = scalar_lea.vmem %s34_s30, 4096  ;;  %p534_p12 = scmp.lt.s32.totalorder %s34_s30, %s34_s30 }
  0x1b   :  { %p530_p11 = scmp.ne.s32.totalorder %s34_s30, %s529_s12  ;;  %p535_p13 = scmp.lt.s32.totalorder %s529_s12, %s529_s12 }
  0x1d   :  { %p536_p0 = por %p535_p13, %p534_p12 }
  0x1f   :  { %p537_p1 = pnand %p536_p0, %p530_p11 }
  0x21   :  { %540 = shalt.err (!%p537_p1)
}
  0x22   :  { %39 = dma.hbm_to_vmem [thread:$0]  %s737_s3, 4096, %s34_s30, [#allocation6], %s570_s25, %s570_s25, %s571_s26  }
  0x23   :  { %563 = dma.done.wait [#allocation3], 256  }
  0x24   :  { %564 = vsyncadd [#allocation3], 4294967040 }
  0x25   :  { %565 = dma.done.wait [#allocation6], 4096  }
  0x26   :  { %566 = vsyncadd [#allocation6], 4294963200  ;;  %v573_v0 = vmov 2   ;;  %v574_v1 = vmov 0   ;;  %v640_v2 = vld [vmem:[%s735_s1] sm:$0xff]  ;;  %v187_v3 = vld [vmem:[#allocation5 + $0x80] sm:$0xff] }
  0x27   :  { %488 = vset.pattern.permute.xlu1 %v573_v0  ;;  %486 = vset.pattern.permute.xlu0 %v574_v1  ;;  %v91_v4 = vadd.s32 84, %v640_v2  ;;  %v55_v5 = vadd.s32 123, %v640_v2  ;;  %v647_v6 = vld [vmem:[%s735_s1 + $0x8] sm:$0xff]  ;;  %v188_v7 = vld [vmem:[#allocation5 + $0x88] sm:$0xff]  ;;  %v171_v8 = vld [vmem:[#allocation5] sm:$0xff]  ;;  %v71_v13 = vadd.s32 91, %v640_v2 }
  0x28   :  { %v172_v9 = vld [vmem:[#allocation5 + $0x8] sm:$0xff]  ;;  %v436_v10 = vpack.c.bf16 %v188_v7, %v187_v3  ;;  %v56_v12 = vadd.s32 123, %v647_v6  ;;  %v189_v14 = vld [vmem:[#allocation5 + $0x90] sm:$0xff]  ;;  %v190_v15 = vld [vmem:[#allocation5 + $0x98] sm:$0xff]  ;;  %v575_v20 = vmov 1   ;;  %v72_v23 = vadd.s32 91, %v647_v6 }
  0x29   :  { %94 = vperm.xlu1 %488, %v91_v4   ;;  %58 = vperm.xlu0 %486, %v55_v5   ;;  %v438_v11 = vpack.c.bf16 %v172_v9, %v171_v8  ;;  %v440_v16 = vpack.c.bf16 %v190_v15, %v189_v14  ;;  %v173_v17 = vld [vmem:[#allocation5 + $0x10] sm:$0xff]  ;;  %v174_v18 = vld [vmem:[#allocation5 + $0x18] sm:$0xff]  ;;  %v191_v21 = vld [vmem:[#allocation5 + $0xa0] sm:$0xff]  ;;  %v111_v24 = vadd.s32 60, %v640_v2  ;;  %v576_v29 = vmov 3  }
  0x2a   :  { %437 = vmatprep.subr.bf16.mxu0 %v436_v10  ;;  %v442_v19 = vpack.c.bf16 %v174_v18, %v173_v17  ;;  %v192_v22 = vld [vmem:[#allocation5 + $0xa8] sm:$0xff]  ;;  %v175_v26 = vld [vmem:[#allocation5 + $0x20] sm:$0xff]  ;;  %v193_v30 = vld [vmem:[#allocation5 + $0xb0] sm:$0xff]  ;;  %v112_v32 = vadd.s32 60, %v647_v6  ;;  %v92_v36 = vadd.s32 84, %v647_v6  ;;  %v577_v46 = vmov 4  }
  0x2b   :  { %439 = vmatpush3.bf16.msra.mxu0 %v438_v11  ;;  %v444_v25 = vpack.c.bf16 %v192_v22, %v191_v21  ;;  %v176_v27 = vld [vmem:[#allocation5 + $0x28] sm:$0xff]  ;;  %v194_v31 = vld [vmem:[#allocation5 + $0xb8] sm:$0xff]  ;;  %v177_v34 = vld [vmem:[#allocation5 + $0x30] sm:$0xff]  ;;  %v578_v56 = vmov 5   ;;  %vm285_vm0 = vcmask 1043456   ;;  %vm579_vm1 = vmmov 1  }
  0x2c   :  { %441 = vmatprep.subr.bf16.mxu0 %v440_v16  ;;  %v446_v28 = vpack.c.bf16 %v176_v27, %v175_v26  ;;  %v448_v33 = vpack.c.bf16 %v194_v31, %v193_v30  ;;  %v178_v35 = vld [vmem:[#allocation5 + $0x38] sm:$0xff]  ;;  %v195_v38 = vld [vmem:[#allocation5 + $0xc0] sm:$0xff]  ;;  %v196_v39 = vld [vmem:[#allocation5 + $0xc8] sm:$0xff]  ;;  %vm278_vm3 = vcmask 97280   ;;  %v52_v7 = vlaneseq }
  0x2d   :  { %489 = vset.pattern.permute.xlu1 %v574_v1  ;;  %487 = vset.pattern.permute.xlu0 %v575_v20  ;;  %v450_v37 = vpack.c.bf16 %v178_v35, %v177_v34  ;;  %v452_v40 = vpack.c.bf16 %v196_v39, %v195_v38  ;;  %v179_v41 = vld [vmem:[#allocation5 + $0x40] sm:$0xff]  ;;  %v180_v42 = vld [vmem:[#allocation5 + $0x48] sm:$0xff]  ;;  %v197_v44 = vld [vmem:[#allocation5 + $0xd0] sm:$0xff] }
  0x2e   :  { %61 = vperm.xlu1 %489, %v56_v12   ;;  %74 = vperm.xlu0 %487, %v71_v13   ;;  %v454_v43 = vpack.c.bf16 %v180_v42, %v179_v41  ;;  %v198_v45 = vld [vmem:[#allocation5 + $0xd8] sm:$0xff]  ;;  %v181_v48 = vld [vmem:[#allocation5 + $0x50] sm:$0xff]  ;;  %v199_v51 = vld [vmem:[#allocation5 + $0xe0] sm:$0xff]  ;;  %v666_v9 = vand.u32 127, %v52_v7 }
  0x2f   :  { %443 = vmatpush3.bf16.msra.mxu0 %v442_v19  ;;  %v456_v47 = vpack.c.bf16 %v198_v45, %v197_v44  ;;  %v182_v49 = vld [vmem:[#allocation5 + $0x58] sm:$0xff]  ;;  %v200_v52 = vld [vmem:[#allocation5 + $0xe8] sm:$0xff]  ;;  %v183_v54 = vld [vmem:[#allocation5 + $0x60] sm:$0xff] }
  0x30   :  { %445 = vmatprep.subr.bf16.mxu0 %v444_v25  ;;  %v458_v50 = vpack.c.bf16 %v182_v49, %v181_v48  ;;  %v460_v53 = vpack.c.bf16 %v200_v52, %v199_v51  ;;  %v184_v55 = vld [vmem:[#allocation5 + $0x68] sm:$0xff]  ;;  %v201_v58 = vld [vmem:[#allocation5 + $0xf0] sm:$0xff]  ;;  %v202_v59 = vld [vmem:[#allocation5 + $0xf8] sm:$0xff]  ;;  %v669_v12 = vadd.s32 128, %v666_v9 }
  0x31   :  { %v462_v57 = vpack.c.bf16 %v184_v55, %v183_v54  ;;  %v464_v60 = vpack.c.bf16 %v202_v59, %v201_v58  ;;  %v185_v61 = vld [vmem:[#allocation5 + $0x70] sm:$0xff]  ;;  %v186_v62 = vld [vmem:[#allocation5 + $0x78] sm:$0xff]  ;;  %vm469_vm2 = vmpackc.low %vm285_vm0, %vm579_vm1 }
  0x32   :  { %490 = vset.pattern.permute.xlu1 %v575_v20  ;;  %491 = vset.pattern.permute.xlu0 %v576_v29  ;;  %v50_v63 = vld [vmem:[#allocation2] sm:$0xff]  ;;  %v466_v3 = vpack.c.bf16 %v186_v62, %v185_v61  ;;  %v47_v5 = vld [vmem:[%s734_s0 + $0x8] sm:$0xff] }
  0x33   :  { %77 = vperm.xlu1 %490, %v72_v23   ;;  %114 = vperm.xlu0 %491, %v111_v24  }
  0x34   :  { %447 = vmatpush3.bf16.msra.mxu0 %v446_v28 }
  0x35   :  { %449 = vmatprep.subr.bf16.mxu0 %v448_v33 }
  0x37   :  { %492 = vset.pattern.permute.xlu1 %v573_v0  ;;  %117 = vperm.xlu0 %491, %v112_v32   ;;  %v51_v0 = vld [vmem:[#allocation2 + $0x8] sm:$0xf] }
  0x38   :  { %97 = vperm.xlu1 %492, %v92_v36   ;;  %451 = vmatpush3.bf16.msra.mxu0 %v450_v37  ;;  %v468_v4 = vpack.c.bf16 %v51_v0, %v50_v63 }
  0x39   :  { %453 = vmatprep.subr.bf16.mxu0 %v452_v40 }
  0x3a   :  { %470 = vmatprep.subr.msk.bf16.mxu1 %vm469_vm2, %v468_v4 }
  0x3b   :  { %495 = vset.pattern.permute.xlu0 %v577_v46  ;;  %473 = vmatpush3.bf16.msk.msra.mxu1 %vm469_vm2, %v468_v4 }
  0x3c   :  { %493 = vset.pattern.permute.xlu1 %v577_v46  ;;  %135 = vperm.xlu0 %495, %v647_v6  }
  0x3d   :  { %132 = vperm.xlu1 %493, %v640_v2   ;;  %455 = vmatpush3.bf16.msra.mxu0 %v454_v43 }
  0x3e   :  { %457 = vmatprep.subr.bf16.mxu0 %v456_v47 }
  0x40   :  { %496 = vset.pattern.permute.xlu0 %v578_v56 }
  0x41   :  { %494 = vset.pattern.permute.xlu1 %v578_v56  ;;  %459 = vmatpush3.bf16.msra.mxu0 %v458_v50 }
  0x42   :  { %150 = vperm.xlu1 %494, %v640_v2   ;;  %461 = vmatprep.subr.bf16.mxu0 %v460_v53  ;;  %v46_v2 = vld [vmem:[%s734_s0] sm:$0xff]  ;;  %s580_s0 = smov [#allocation7]  }
  0x43   :  { %433 = vmatprep.mubr.msk.f32.mxu1 %vm278_vm3, %v46_v2  ;;  %s371_s20 = sshll.u32 %s580_s0, 4  ;;  %s372_s20 = int_to_ptr.vmem [resolvable:$true] %s371_s20 }
  0x44   :  { %434 = vmatmul.mubr.msk.f32.vlgmr.msra.gmra.mrb[0].mxu1 %vm278_vm3, %v47_v5  ;;  %s541_s21 = scalar_lea.vmem %s372_s20, 256  ;;  %p546_p3 = scmp.lt.s32.totalorder %s372_s20, %s372_s20 }
  0x45   :  { %463 = vmatpush3.bf16.msra.mxu0 %v462_v57  ;;  %p542_p2 = scmp.ne.s32.totalorder %s372_s20, %s541_s21  ;;  %p547_p4 = scmp.lt.s32.totalorder %s541_s21, %s541_s21 }
  0x46   :  { %153 = vperm.xlu1 %494, %v647_v6   ;;  %465 = vmatprep.subr.bf16.mxu0 %v464_v60 }
  0x47   :  { %p548_p5 = por %p547_p4, %p546_p3 }
  0x49   :  { %467 = vmatpush3.bf16.msra.mxu0 %v466_v3  ;;  %p549_p6 = pnand %p548_p5, %p542_p2 }
  0xa8   :  { %v95_v8 = vpop.permute.xlu1 %94  ;;  %v59_v6 = vpop.permute.xlu0 %58 }
  0xa9   :  { %vm63_vm4 = vcmp.eq.s32.totalorder %v666_v9, %v59_v6  ;;  %vm64_vm5 = vcmp.eq.s32.totalorder %v669_v12, %v59_v6  ;;  %vm99_vm10 = vcmp.eq.s32.totalorder %v666_v9, %v95_v8  ;;  %vm100_vm11 = vcmp.eq.s32.totalorder %v669_v12, %v95_v8 }
  0xaa   :  { %v67_v15 = vsel %vm63_vm4, 1, %v574_v1  ;;  %v68_v16 = vsel %vm64_vm5, 1, %v574_v1  ;;  %v103_v25 = vsel %vm99_vm10, 1, %v574_v1  ;;  %v104_v26 = vsel %vm100_vm11, 1, %v574_v1 }
  0xad   :  { %v62_v10 = vpop.permute.xlu1 %61  ;;  %v75_v11 = vpop.permute.xlu0 %74 }
  0xae   :  { %vm79_vm6 = vcmp.eq.s32.totalorder %v666_v9, %v75_v11  ;;  %vm80_vm7 = vcmp.eq.s32.totalorder %v669_v12, %v75_v11  ;;  %vm65_vm12 = vcmp.eq.s32.totalorder %v666_v9, %v62_v10  ;;  %vm66_vm13 = vcmp.eq.s32.totalorder %v669_v12, %v62_v10 }
  0xaf   :  { %v83_v17 = vsel %vm79_vm6, 1, %v574_v1  ;;  %v84_v18 = vsel %vm80_vm7, 1, %v574_v1  ;;  %v69_v27 = vsel %vm65_vm12, 1, %v574_v1  ;;  %v70_v28 = vsel %vm66_vm13, 1, %v574_v1 }
  0xb0   :  { %v87_v20 = vadd.s32 %v83_v17, %v67_v15  ;;  %v88_v21 = vadd.s32 %v84_v18, %v68_v16 }
  0xb2   :  { %v78_v13 = vpop.permute.xlu1 %77  ;;  %v115_v14 = vpop.permute.xlu0 %114  ;;  %v107_v34 = vadd.s32 %v103_v25, %v87_v20  ;;  %v108_v35 = vadd.s32 %v104_v26, %v88_v21 }
  0xb3   :  { %vm81_vm8 = vcmp.eq.s32.totalorder %v666_v9, %v78_v13  ;;  %vm82_vm9 = vcmp.eq.s32.totalorder %v669_v12, %v78_v13  ;;  %vm119_vm0 = vcmp.eq.s32.totalorder %v666_v9, %v115_v14  ;;  %vm120_vm1 = vcmp.eq.s32.totalorder %v669_v12, %v115_v14 }
  0xb4   :  { %v85_v23 = vsel %vm81_vm8, 1, %v574_v1  ;;  %v86_v24 = vsel %vm82_vm9, 1, %v574_v1  ;;  %v123_v36 = vsel %vm119_vm0, 1, %v574_v1  ;;  %v124_v37 = vsel %vm120_vm1, 1, %v574_v1 }
  0xb5   :  { %v89_v31 = vadd.s32 %v85_v23, %v69_v27  ;;  %v90_v32 = vadd.s32 %v86_v24, %v70_v28  ;;  %v127_v45 = vadd.s32 %v123_v36, %v107_v34  ;;  %v128_v46 = vadd.s32 %v124_v37, %v108_v35 }
  0xb6   :  { %v118_v19 = vpop.permute.xlu0 %117 }
  0xb7   :  { %v98_v22 = vpop.permute.xlu1 %97  ;;  %vm121_vm2 = vcmp.eq.s32.totalorder %v666_v9, %v118_v19  ;;  %vm122_vm3 = vcmp.eq.s32.totalorder %v669_v12, %v118_v19 }
  0xb8   :  { %vm101_vm14 = vcmp.eq.s32.totalorder %v666_v9, %v98_v22  ;;  %vm102_vm15 = vcmp.eq.s32.totalorder %v669_v12, %v98_v22  ;;  %v125_v41 = vsel %vm121_vm2, 1, %v574_v1  ;;  %v126_v42 = vsel %vm122_vm3, 1, %v574_v1 }
  0xb9   :  { %v105_v29 = vsel %vm101_vm14, 1, %v574_v1  ;;  %v106_v30 = vsel %vm102_vm15, 1, %v574_v1 }
  0xba   :  { %v109_v39 = vadd.s32 %v105_v29, %v89_v31  ;;  %v110_v40 = vadd.s32 %v106_v30, %v90_v32 }
  0xbb   :  { %v136_v33 = vpop.permute.xlu0 %135 }
  0xbc   :  { %v133_v38 = vpop.permute.xlu1 %132  ;;  %vm139_vm6 = vcmp.eq.s32.totalorder %v666_v9, %v136_v33  ;;  %vm140_vm7 = vcmp.eq.s32.totalorder %v669_v12, %v136_v33  ;;  %v129_v47 = vadd.s32 %v125_v41, %v109_v39  ;;  %v130_v48 = vadd.s32 %v126_v42, %v110_v40 }
  0xbd   :  { %vm137_vm4 = vcmp.eq.s32.totalorder %v666_v9, %v133_v38  ;;  %vm138_vm5 = vcmp.eq.s32.totalorder %v669_v12, %v133_v38  ;;  %v143_v49 = vsel %vm139_vm6, 1, %v574_v1  ;;  %v144_v50 = vsel %vm140_vm7, 1, %v574_v1 }
  0xbe   :  { %v141_v43 = vsel %vm137_vm4, 1, %v574_v1  ;;  %v142_v44 = vsel %vm138_vm5, 1, %v574_v1  ;;  %v147_v58 = vadd.s32 %v143_v49, %v129_v47  ;;  %v148_v59 = vadd.s32 %v144_v50, %v130_v48 }
  0xbf   :  { %v145_v52 = vadd.s32 %v141_v43, %v127_v45  ;;  %v146_v53 = vadd.s32 %v142_v44, %v128_v46 }
  0xc1   :  { %v151_v51 = vpop.permute.xlu1 %150 }
  0xc2   :  { %vm155_vm8 = vcmp.eq.s32.totalorder %v666_v9, %v151_v51  ;;  %vm156_vm9 = vcmp.eq.s32.totalorder %v669_v12, %v151_v51 }
  0xc3   :  { %v159_v54 = vsel %vm155_vm8, 1, %v574_v1  ;;  %v160_v55 = vsel %vm156_vm9, 1, %v574_v1 }
  0xc4   :  { %v163_v56 = vadd.s32 %v159_v54, %v145_v52  ;;  %v164_v57 = vadd.s32 %v160_v55, %v146_v53 }
  0xc5   :  { %v154_v60 = vpop.permute.xlu1 %153 }
  0xc6   :  { %vm157_vm10 = vcmp.eq.s32.totalorder %v666_v9, %v154_v60  ;;  %vm158_vm11 = vcmp.eq.s32.totalorder %v669_v12, %v154_v60  ;;  %v168_v61 = vcvt.s32.f32 %v164_v57  ;;  %v167_v62 = vcvt.s32.f32 %v163_v56 }
  0xc7   :  { %v161_v63 = vsel %vm157_vm10, 1, %v574_v1  ;;  %v162_v0 = vsel %vm158_vm11, 1, %v574_v1 }
  0xc8   :  { %v165_v3 = vadd.s32 %v161_v63, %v147_v58  ;;  %v166_v4 = vadd.s32 %v162_v0, %v148_v59  ;;  %267 = vmatprep.mubr.f32.mxu0 %v168_v61 }
  0xc9   :  { %268 = vmatmul.mubr.f32.vlgmr.msra.gmra.mrb[0].mxu0 %v167_v62 }
  0xca   :  { %v169_v2 = vcvt.s32.f32 %v165_v3  ;;  %v170_v5 = vcvt.s32.f32 %v166_v4 }
  0xcc   :  { %272 = vmatprep.mubr.f32.mxu0 %v170_v5 }
  0xcd   :  { %273 = vmatmul.mubr.f32.gmra.mrb[2].mxu0 %v169_v2 }
 0x117   :  { %v435_v7 = vpop.f32.mrb[0].mxu1 }
 0x118   :  { %v355_v8 = vpop.f32.mrb[1].mxu1 }
 0x19c   :  { %v419_v6 = vpop.f32.mrb[0].mxu0 }
 0x19d   :  { %v420_v9 = vpop.f32.mrb[1].mxu0 }
 0x19e   :  { %v421_v10 = vadd.f32 %v420_v9, %v419_v6 }
 0x1a0   :  { %v356_v11 = vadd.f32 %v421_v10, %v355_v8  ;;  %v422_v12 = vpop.f32.mrb[2].mxu0 }
 0x1a1   :  { %v423_v13 = vpop.f32.mrb[3].mxu0 }
 0x1a2   :  { %364 = vst [vmem:[#allocation7] sm:$0xff] %v356_v11  ;;  %v424_v1 = vadd.f32 %v423_v13, %v422_v12 }
 0x1a4   :  { %v361_v14 = vadd.f32 %v435_v7, %v424_v1 }
 0x1a6   :  { %365 = vst [vmem:[#allocation7 + $0x8] sm:$0xff] %v361_v14 }
 0x1a7   :  { %552 = shalt.err (!%p549_p6)
}
 0x1a8   :  { %s553_s24 = scalar_lea.hbm %s738_s4, 256 }
 0x1a9   :  { %p554_p7 = scmp.ne.s32.totalorder %s738_s4, %s553_s24  ;;  %p557_p8 = scmp.lt.u32.totalorder %s553_s24, %s738_s4 }
 0x1ab   :  { %p559_p9 = pnand %p557_p8, %p554_p7 }
 0x1ad   :  { %562 = shalt.err (!%p559_p9)
}
 0x1ae   :  { %377 = dma.vmem_to_hbm [thread:$0]  %s372_s20, 256, %s738_s4, [#allocation4], %s570_s25, %s570_s25, %s571_s26  }
 0x1af   :  { %567 = dma.done.wait [#allocation4], 256  }
 0x1b0   :  { %568 = vsyncadd [#allocation4], 4294967040 }
 0x1b1   :  { %381 = vsyncpa [#allocation3], 1 }
 0x1b2   :  { %382 = vsyncpa [#allocation6], 1 }
 0x1b3   :  { %383 = vsyncpa [#allocation4], 1 }

</bundles_post_ra>
